<compile_context>
chip_gen: v7x
topology: tpu7x:2x2x1
jax: 0.10.0
libtpu: 0.0.40
codegen_flags: <defaults>
</compile_context>

<pallas_src>
import math

import jax
import jax.numpy as jnp
import numpy as np
from jax.experimental import pallas as pl
from jax.experimental.pallas import tpu as pltpu


# ---------------------------------------------------------------------------
# Glue: graph laplacian with self loops (same math as the PyTorch helper).
# ---------------------------------------------------------------------------
def calculate_laplacian_with_self_loop(adj: jnp.ndarray) -> jnp.ndarray:
    n = adj.shape[0]
    matrix = adj + jnp.eye(n, dtype=adj.dtype)
    row_sum = matrix.sum(axis=1)
    d_inv_sqrt = jnp.power(row_sum, -0.5)
    d_inv_sqrt = jnp.where(jnp.isinf(d_inv_sqrt), 0.0, d_inv_sqrt)
    d_mat_inv_sqrt = jnp.diag(d_inv_sqrt)
    return (matrix @ d_mat_inv_sqrt).T @ d_mat_inv_sqrt


def _round_up(x: int, m: int) -> int:
    return -(-x // m) * m


_SINGLE_BUFFER_OK = True  # flipped off once if this jax build rejects pl.Buffered(1)


# ---------------------------------------------------------------------------
# Kernel: one grid step = one block of `bt` batches (rows = bt * n_pad).
# ---------------------------------------------------------------------------
def _tgcn_kernel(lap_ref, x_ref, h_ref, wx_ref, wh_ref, b_ref, o_ref, y_ref):
    # Feature transform, batch folded into the MXU M dimension:
    #   y = X @ W_x + H @ W_h          (rows_per_block, o_pad)
    # Associativity: L @ ([X|H] @ W) == L @ (X @ W_x + H @ W_h), so the HBM concat
    # of the PyTorch forward never materializes.  y goes to explicit VMEM scratch.
    y_ref[...] = (
        jnp.dot(x_ref[...], wx_ref[...], preferred_element_type=jnp.float32)
        + jnp.dot(h_ref[...], wh_ref[...], preferred_element_type=jnp.float32)
    ).astype(y_ref.dtype)
    # Graph propagation as ONE matmul against the block-diagonal laplacian
    # (full MXU M-dim utilization, no per-batch loop); single hoisted bias add.
    o_ref[...] = (
        jnp.dot(lap_ref[...], y_ref[...], preferred_element_type=jnp.float32)
        + b_ref[...]
    )


# ---------------------------------------------------------------------------
# Pallas implementation of TGCNGraphConvolution.forward
# ---------------------------------------------------------------------------
def tgcn_graph_convolution(inputs, hidden_state, laplacian, weights, biases,
                           num_gru_units, output_dim, *,
                           compute_dtype=jnp.float32, target_rows=256):
    """inputs: (B, N, F); hidden_state: (B, N*G) -> returns (B, N*output_dim) f32."""
    global _SINGLE_BUFFER_OK

    batch_size, num_nodes, feature_number = inputs.shape
    g = num_gru_units
    o = output_dim
    assert weights.shape == (feature_number + g, o)

    x = inputs.astype(jnp.float32)
    hidden = hidden_state.reshape(batch_size, num_nodes, g).astype(jnp.float32)
    lap = laplacian.astype(jnp.float32)
    w = weights.astype(jnp.float32)
    bias = biases.astype(jnp.float32)

    # --- hardware-friendly padding -------------------------------------------
    n_pad = _round_up(num_nodes, 8)              # sublane tile
    o_pad = _round_up(max(o, 128), 128)          # lane-dense output stores

    # Batches per grid step: aim for ~256-row M tiles (v6e/v7x MXU), but keep the
    # grid >= 2 steps whenever batch >= 2 so the "parallel" axis has something to
    # shard across v7x's two TensorCores.
    bt = max(1, min(batch_size, max(1, target_rows // n_pad)))
    num_blocks = -(-batch_size // bt)
    if num_blocks < 2 and batch_size >= 2:
        bt = -(-batch_size // 2)
        num_blocks = -(-batch_size // bt)
    b_pad = num_blocks * bt
    rows_per_block = bt * n_pad

    if n_pad != num_nodes:
        x = jnp.pad(x, ((0, 0), (0, n_pad - num_nodes), (0, 0)))
        hidden = jnp.pad(hidden, ((0, 0), (0, n_pad - num_nodes), (0, 0)))
        lap = jnp.pad(lap, ((0, n_pad - num_nodes), (0, n_pad - num_nodes)))
    if b_pad != batch_size:
        x = jnp.pad(x, ((0, b_pad - batch_size), (0, 0), (0, 0)))
        hidden = jnp.pad(hidden, ((0, b_pad - batch_size), (0, 0), (0, 0)))

    # Block-diagonal laplacian for one batch block (bt copies of L on the diagonal)
    # -> one matmul per grid step.  Degenerates to L itself when bt == 1.
    lap_bd = lap if bt == 1 else jnp.kron(jnp.eye(bt, dtype=jnp.float32), lap)

    # Split W along the concat axis (rows 0..F-1 multiply inputs, rest hidden)
    # and zero-pad the output dimension (padded bias columns stay zero).
    w_x = w[:feature_number, :]
    w_h = w[feature_number:, :]
    if o_pad != o:
        w_x = jnp.pad(w_x, ((0, 0), (0, o_pad - o)))
        w_h = jnp.pad(w_h, ((0, 0), (0, o_pad - o)))
        bias = jnp.pad(bias, (0, o_pad - o))
    bias2d = bias.reshape(1, o_pad)

    # Flatten (batch, node) rows; cast MXU operands to the compute dtype.
    x2d = x.reshape(b_pad * n_pad, feature_number).astype(compute_dtype)
    h2d = hidden.reshape(b_pad * n_pad, g).astype(compute_dtype)
    lap_bd = lap_bd.astype(compute_dtype)
    w_x = w_x.astype(compute_dtype)
    w_h = w_h.astype(compute_dtype)

    out_shape = jax.ShapeDtypeStruct((b_pad * n_pad, o_pad), jnp.float32)

    def build_and_run(single_buffer_invariants):
        inv_kw = {}
        if single_buffer_invariants:
            # Grid-invariant operands are never re-fetched across grid steps; drop
            # the second pipeline buffer to halve their VMEM footprint.
            inv_kw = dict(pipeline_mode=pl.Buffered(1))
        grid_spec = pltpu.PrefetchScalarGridSpec(
            num_scalar_prefetch=0,
            grid=(num_blocks,),
            in_specs=[
                pl.BlockSpec((rows_per_block, rows_per_block),
                             lambda i: (0, 0), **inv_kw),                    # L_bd
                pl.BlockSpec((rows_per_block, feature_number),
                             lambda i: (i, 0)),                              # X
                pl.BlockSpec((rows_per_block, g), lambda i: (i, 0)),         # H
                pl.BlockSpec((feature_number, o_pad),
                             lambda i: (0, 0), **inv_kw),                    # W_x
                pl.BlockSpec((g, o_pad), lambda i: (0, 0), **inv_kw),        # W_h
                pl.BlockSpec((1, o_pad), lambda i: (0, 0), **inv_kw),        # bias
            ],
            out_specs=pl.BlockSpec((rows_per_block, o_pad), lambda i: (i, 0)),
            # Explicit scratch for the feature-transform intermediate y.
            scratch_shapes=[pltpu.VMEM((rows_per_block, o_pad), compute_dtype)],
        )
        return pl.pallas_call(
            _tgcn_kernel,
            out_shape=out_shape,
            grid_spec=grid_spec,
            compiler_params=pltpu.CompilerParams(
                dimension_semantics=("parallel",),
                vmem_limit_bytes=64 * 1024 * 1024,
            ),
        )(lap_bd, x2d, h2d, w_x, w_h, bias2d)

    out = None
    if _SINGLE_BUFFER_OK:
        try:
            out = jax.block_until_ready(build_and_run(True))
        except Exception:
            # pl.Buffered(1) rejected by this jax build -> fall back to default
            # double buffering (correctness unaffected, only VMEM hygiene lost).
            _SINGLE_BUFFER_OK = False
            out = None
    if out is None:
        out = build_and_run(False)

    out = out.reshape(b_pad, n_pad, o_pad)[:batch_size, :num_nodes, :o]
    return out.reshape(batch_size, num_nodes * o)


# ---------------------------------------------------------------------------
# Deterministic parameter init (mirrors reset_parameters) + exact reference
# ---------------------------------------------------------------------------
def init_params(key, num_gru_units, feature_number, output_dim, bias_init=0.0):
    c = num_gru_units + feature_number
    a = math.sqrt(6.0 / (c + output_dim))       # Xavier uniform
    weights = jax.random.uniform(key, (c, output_dim), jnp.float32, -a, a)
    biases = jnp.full((output_dim,), bias_init, dtype=jnp.float32)
    return weights, biases


def reference_forward(inputs, hidden_state, laplacian, weights, biases,
                      num_gru_units, output_dim):
    """Plain-JAX replica of the exact PyTorch forward, for verification."""
    b, n, f = inputs.shape
    g = num_gru_units
    o = output_dim
    hidden = hidden_state.reshape(b, n, g)
    concat = jnp.concatenate((inputs, hidden), axis=2)                        # (B,N,C)
    cat = concat.transpose(1, 0, 2).transpose(0, 2, 1).reshape(n, (g + f) * b)
    ax = laplacian @ cat
    ax = ax.reshape(n, g + f, b).transpose(2, 1, 0).transpose(0, 2, 1)
    ax = ax.reshape(b * n, g + f)
    return (ax @ weights + biases).reshape(b, n * o)


if __name__ == "__main__":
    # weights are (num_gru_units + 17, output_dim)  =>  feature_number = 17
    B, N, F, G, O = 2, 16, 17, 32, 8

    key = jax.random.PRNGKey(0)
    k_adj, k_x, k_h, k_w, k_x2, k_h2 = jax.random.split(key, 6)

    # Symmetric 0/1 adjacency (no self loops; helper adds them).
    adj_raw = (jax.random.uniform(k_adj, (N, N)) > 0.7).astype(jnp.float32)
    adj = jnp.maximum(adj_raw, adj_raw.T) * (1.0 - jnp.eye(N, dtype=jnp.float32))
    laplacian = calculate_laplacian_with_self_loop(adj)

    inputs = jax.random.normal(k_x, (B, N, F), jnp.float32)
    hidden_state = jax.random.normal(k_h, (B, N * G), jnp.float32)
    weights, biases = init_params(k_w, G, F, O, bias_init=0.0)

    ref = reference_forward(inputs, hidden_state, laplacian, weights, biases, G, O)

    # 1) Default f32 path (at B=2 the heuristic picks bt=1 -> grid of 2 steps).
    out = jax.block_until_ready(
        tgcn_graph_convolution(inputs, hidden_state, laplacian, weights, biases,
                               num_gru_units=G, output_dim=O))
    assert out.shape == (B, N * O), out.shape
    np.testing.assert_allclose(np.asarray(out), np.asarray(ref), rtol=1e-4, atol=1e-4)

    # 2) Larger batch exercises the block-diagonal laplacian path (bt > 1).
    B2 = 8
    inputs2 = jax.random.normal(k_x2, (B2, N, F), jnp.float32)
    hidden2 = jax.random.normal(k_h2, (B2, N * G), jnp.float32)
    ref2 = reference_forward(inputs2, hidden2, laplacian, weights, biases, G, O)
    out2 = jax.block_until_ready(
        tgcn_graph_convolution(inputs2, hidden2, laplacian, weights, biases,
                               num_gru_units=G, output_dim=O))
    np.testing.assert_allclose(np.asarray(out2), np.asarray(ref2),
                               rtol=1e-4, atol=1e-4)

    # 3) bf16 MXU-operand path (the cheap ~2x HBM/VMEM traffic cut on v6e/v7x).
    out_bf16 = jax.block_until_ready(
        tgcn_graph_convolution(inputs, hidden_state, laplacian, weights, biases,
                               num_gru_units=G, output_dim=O,
                               compute_dtype=jnp.bfloat16))
    np.testing.assert_allclose(np.asarray(out_bf16), np.asarray(ref),
                               rtol=5e-2, atol=5e-2)

    print("KERNEL_OK")
</pallas_src>

<mosaic_0001>
module attributes {stable_mosaic.version = 11 : i64} {
  func.func @_tgcn_kernel(%arg0: i32, %arg1: memref<16x16xf32, #tpu.memory_space<vmem>>, %arg2: memref<16x17xf32, #tpu.memory_space<vmem>>, %arg3: memref<16x32xf32, #tpu.memory_space<vmem>>, %arg4: memref<17x128xf32, #tpu.memory_space<vmem>>, %arg5: memref<32x128xf32, #tpu.memory_space<vmem>>, %arg6: memref<1x128xf32, #tpu.memory_space<vmem>>, %arg7: memref<16x128xf32, #tpu.memory_space<vmem>>, %arg8: memref<16x128xf32, #tpu.memory_space<vmem>>) attributes {dimension_semantics = [#tpu.dimension_semantics<parallel>], iteration_bounds = array<i64: 2>, scalar_prefetch = 0 : i64, scratch_operands = 1 : i64, tpu.core_type = #tpu.core_type<tc>, window_params = [{pipeline_mode = #tpu.pipeline_mode<synchronous>, transform_indices = @transform_0, window_bounds = array<i64: 16, 16>}, {transform_indices = @transform_1, window_bounds = array<i64: 16, 17>}, {transform_indices = @transform_2, window_bounds = array<i64: 16, 32>}, {pipeline_mode = #tpu.pipeline_mode<synchronous>, transform_indices = @transform_3, window_bounds = array<i64: 17, 128>}, {pipeline_mode = #tpu.pipeline_mode<synchronous>, transform_indices = @transform_4, window_bounds = array<i64: 32, 128>}, {pipeline_mode = #tpu.pipeline_mode<synchronous>, transform_indices = @transform_5, window_bounds = array<i64: 1, 128>}, {transform_indices = @transform_6, window_bounds = array<i64: 16, 128>}]} {
    %c0 = arith.constant 0 : index
    %c0_0 = arith.constant 0 : index
    %0 = vector.load %arg2[%c0, %c0_0] : memref<16x17xf32, #tpu.memory_space<vmem>>, vector<16x17xf32>
    %c0_1 = arith.constant 0 : index
    %c0_2 = arith.constant 0 : index
    %1 = vector.load %arg4[%c0_1, %c0_2] : memref<17x128xf32, #tpu.memory_space<vmem>>, vector<17x128xf32>
    %cst = arith.constant dense<0.000000e+00> : vector<16x128xf32>
    %2 = tpu.matmul %0, %1, %cst {dimension_numbers = #tpu.dot_dimension_numbers<[1], [0], [0], [1], [0, 0, 1, 1], [], []>} : vector<16x17xf32>, vector<17x128xf32>, vector<16x128xf32> -> vector<16x128xf32>
    %c0_3 = arith.constant 0 : index
    %c0_4 = arith.constant 0 : index
    %3 = vector.load %arg3[%c0_3, %c0_4] : memref<16x32xf32, #tpu.memory_space<vmem>>, vector<16x32xf32>
    %c0_5 = arith.constant 0 : index
    %c0_6 = arith.constant 0 : index
    %4 = vector.load %arg5[%c0_5, %c0_6] : memref<32x128xf32, #tpu.memory_space<vmem>>, vector<32x128xf32>
    %cst_7 = arith.constant dense<0.000000e+00> : vector<16x128xf32>
    %5 = tpu.matmul %3, %4, %cst_7 {dimension_numbers = #tpu.dot_dimension_numbers<[1], [0], [0], [1], [0, 0, 1, 1], [], []>} : vector<16x32xf32>, vector<32x128xf32>, vector<16x128xf32> -> vector<16x128xf32>
    %6 = arith.addf %2, %5 : vector<16x128xf32>
    %c0_8 = arith.constant 0 : index
    %c0_9 = arith.constant 0 : index
    %7 = vector.load %arg8[%c0_8, %c0_9] : memref<16x128xf32, #tpu.memory_space<vmem>>, vector<16x128xf32>
    tpu.vector_store %arg8[%c0_8, %c0_9], %6 {strides = array<i32>} : memref<16x128xf32, #tpu.memory_space<vmem>>, vector<16x128xf32>,
    %c0_10 = arith.constant 0 : index
    %c0_11 = arith.constant 0 : index
    %8 = vector.load %arg1[%c0_10, %c0_11] : memref<16x16xf32, #tpu.memory_space<vmem>>, vector<16x16xf32>
    %c0_12 = arith.constant 0 : index
    %c0_13 = arith.constant 0 : index
    %9 = vector.load %arg8[%c0_12, %c0_13] : memref<16x128xf32, #tpu.memory_space<vmem>>, vector<16x128xf32>
    %cst_14 = arith.constant dense<0.000000e+00> : vector<16x128xf32>
    %10 = tpu.matmul %8, %9, %cst_14 {dimension_numbers = #tpu.dot_dimension_numbers<[1], [0], [0], [1], [0, 0, 1, 1], [], []>} : vector<16x16xf32>, vector<16x128xf32>, vector<16x128xf32> -> vector<16x128xf32>
    %c0_15 = arith.constant 0 : index
    %c0_16 = arith.constant 0 : index
    %11 = vector.load %arg6[%c0_15, %c0_16] : memref<1x128xf32, #tpu.memory_space<vmem>>, vector<1x128xf32>
    %12 = vector.broadcast %11 : vector<1x128xf32> to vector<16x128xf32>
    %13 = arith.addf %10, %12 : vector<16x128xf32>
    %c0_17 = arith.constant 0 : index
    %c0_18 = arith.constant 0 : index
    %14 = vector.load %arg7[%c0_17, %c0_18] : memref<16x128xf32, #tpu.memory_space<vmem>>, vector<16x128xf32>
    tpu.vector_store %arg7[%c0_17, %c0_18], %13 {strides = array<i32>} : memref<16x128xf32, #tpu.memory_space<vmem>>, vector<16x128xf32>,
    return
  }
  func.func @transform_0(%arg0: i32) -> (i32, i32) {
    %c0_i32 = arith.constant 0 : i32
    %c0_i32_0 = arith.constant 0 : i32
    %c0_i32_1 = arith.constant 0 : i32
    return %c0_i32, %c0_i32_0 : i32, i32
  }
  func.func @transform_1(%arg0: i32) -> (i32, i32) {
    %c0_i32 = arith.constant 0 : i32
    %c0_i32_0 = arith.constant 0 : i32
    return %arg0, %c0_i32 : i32, i32
  }
  func.func @transform_2(%arg0: i32) -> (i32, i32) {
    %c0_i32 = arith.constant 0 : i32
    %c0_i32_0 = arith.constant 0 : i32
    return %arg0, %c0_i32 : i32, i32
  }
  func.func @transform_3(%arg0: i32) -> (i32, i32) {
    %c0_i32 = arith.constant 0 : i32
    %c0_i32_0 = arith.constant 0 : i32
    %c0_i32_1 = arith.constant 0 : i32
    return %c0_i32, %c0_i32_0 : i32, i32
  }
  func.func @transform_4(%arg0: i32) -> (i32, i32) {
    %c0_i32 = arith.constant 0 : i32
    %c0_i32_0 = arith.constant 0 : i32
    %c0_i32_1 = arith.constant 0 : i32
    return %c0_i32, %c0_i32_0 : i32, i32
  }
  func.func @transform_5(%arg0: i32) -> (i32, i32) {
    %c0_i32 = arith.constant 0 : i32
    %c0_i32_0 = arith.constant 0 : i32
    %c0_i32_1 = arith.constant 0 : i32
    return %c0_i32, %c0_i32_0 : i32, i32
  }
  func.func @transform_6(%arg0: i32) -> (i32, i32) {
    %c0_i32 = arith.constant 0 : i32
    %c0_i32_0 = arith.constant 0 : i32
    return %arg0, %c0_i32 : i32, i32
  }
}

module attributes {stable_mosaic.version = 11 : i64} {
  func.func @_tgcn_kernel(%arg0: i32, %arg1: memref<16x16xf32, #tpu.memory_space<vmem>>, %arg2: memref<16x17xf32, #tpu.memory_space<vmem>>, %arg3: memref<16x32xf32, #tpu.memory_space<vmem>>, %arg4: memref<17x128xf32, #tpu.memory_space<vmem>>, %arg5: memref<32x128xf32, #tpu.memory_space<vmem>>, %arg6: memref<1x128xf32, #tpu.memory_space<vmem>>, %arg7: memref<16x128xf32, #tpu.memory_space<vmem>>, %arg8: memref<16x128xf32, #tpu.memory_space<vmem>>) attributes {dimension_semantics = [#tpu.dimension_semantics<parallel>], iteration_bounds = array<i64: 2>, scalar_prefetch = 0 : i64, scratch_operands = 1 : i64, tpu.core_type = #tpu.core_type<tc>, window_params = [{pipeline_mode = #tpu.pipeline_mode<synchronous>, transform_indices = @transform_0, window_bounds = array<i64: 16, 16>}, {transform_indices = @transform_1, window_bounds = array<i64: 16, 17>}, {transform_indices = @transform_2, window_bounds = array<i64: 16, 32>}, {pipeline_mode = #tpu.pipeline_mode<synchronous>, transform_indices = @transform_3, window_bounds = array<i64: 17, 128>}, {pipeline_mode = #tpu.pipeline_mode<synchronous>, transform_indices = @transform_4, window_bounds = array<i64: 32, 128>}, {pipeline_mode = #tpu.pipeline_mode<synchronous>, transform_indices = @transform_5, window_bounds = array<i64: 1, 128>}, {transform_indices = @transform_6, window_bounds = array<i64: 16, 128>}]} {
    %c0 = arith.constant 0 : index
    %c0_0 = arith.constant 0 : index
    %0 = vector.load %arg2[%c0, %c0_0] : memref<16x17xf32, #tpu.memory_space<vmem>>, vector<16x17xf32>
    %c0_1 = arith.constant 0 : index
    %c0_2 = arith.constant 0 : index
    %1 = vector.load %arg4[%c0_1, %c0_2] : memref<17x128xf32, #tpu.memory_space<vmem>>, vector<17x128xf32>
    %cst = arith.constant dense<0.000000e+00> : vector<16x128xf32>
    %2 = tpu.matmul %0, %1, %cst {dimension_numbers = #tpu.dot_dimension_numbers<[1], [0], [0], [1], [0, 0, 1, 1], [], []>} : vector<16x17xf32>, vector<17x128xf32>, vector<16x128xf32> -> vector<16x128xf32>
    %c0_3 = arith.constant 0 : index
    %c0_4 = arith.constant 0 : index
    %3 = vector.load %arg3[%c0_3, %c0_4] : memref<16x32xf32, #tpu.memory_space<vmem>>, vector<16x32xf32>
    %c0_5 = arith.constant 0 : index
    %c0_6 = arith.constant 0 : index
    %4 = vector.load %arg5[%c0_5, %c0_6] : memref<32x128xf32, #tpu.memory_space<vmem>>, vector<32x128xf32>
    %cst_7 = arith.constant dense<0.000000e+00> : vector<16x128xf32>
    %5 = tpu.matmul %3, %4, %cst_7 {dimension_numbers = #tpu.dot_dimension_numbers<[1], [0], [0], [1], [0, 0, 1, 1], [], []>} : vector<16x32xf32>, vector<32x128xf32>, vector<16x128xf32> -> vector<16x128xf32>
    %6 = arith.addf %2, %5 : vector<16x128xf32>
    %c0_8 = arith.constant 0 : index
    %c0_9 = arith.constant 0 : index
    %7 = vector.load %arg8[%c0_8, %c0_9] : memref<16x128xf32, #tpu.memory_space<vmem>>, vector<16x128xf32>
    tpu.vector_store %arg8[%c0_8, %c0_9], %6 {strides = array<i32>} : memref<16x128xf32, #tpu.memory_space<vmem>>, vector<16x128xf32>,
    %c0_10 = arith.constant 0 : index
    %c0_11 = arith.constant 0 : index
    %8 = vector.load %arg1[%c0_10, %c0_11] : memref<16x16xf32, #tpu.memory_space<vmem>>, vector<16x16xf32>
    %c0_12 = arith.constant 0 : index
    %c0_13 = arith.constant 0 : index
    %9 = vector.load %arg8[%c0_12, %c0_13] : memref<16x128xf32, #tpu.memory_space<vmem>>, vector<16x128xf32>
    %cst_14 = arith.constant dense<0.000000e+00> : vector<16x128xf32>
    %10 = tpu.matmul %8, %9, %cst_14 {dimension_numbers = #tpu.dot_dimension_numbers<[1], [0], [0], [1], [0, 0, 1, 1], [], []>} : vector<16x16xf32>, vector<16x128xf32>, vector<16x128xf32> -> vector<16x128xf32>
    %c0_15 = arith.constant 0 : index
    %c0_16 = arith.constant 0 : index
    %11 = vector.load %arg6[%c0_15, %c0_16] : memref<1x128xf32, #tpu.memory_space<vmem>>, vector<1x128xf32>
    %12 = vector.broadcast %11 : vector<1x128xf32> to vector<16x128xf32>
    %13 = arith.addf %10, %12 : vector<16x128xf32>
    %c0_17 = arith.constant 0 : index
    %c0_18 = arith.constant 0 : index
    %14 = vector.load %arg7[%c0_17, %c0_18] : memref<16x128xf32, #tpu.memory_space<vmem>>, vector<16x128xf32>
    tpu.vector_store %arg7[%c0_17, %c0_18], %13 {strides = array<i32>} : memref<16x128xf32, #tpu.memory_space<vmem>>, vector<16x128xf32>,
    return
  }
  func.func @transform_0(%arg0: i32) -> (i32, i32) {
    %c0_i32 = arith.constant 0 : i32
    %c0_i32_0 = arith.constant 0 : i32
    %c0_i32_1 = arith.constant 0 : i32
    return %c0_i32, %c0_i32_0 : i32, i32
  }
  func.func @transform_1(%arg0: i32) -> (i32, i32) {
    %c0_i32 = arith.constant 0 : i32
    %c0_i32_0 = arith.constant 0 : i32
    return %arg0, %c0_i32 : i32, i32
  }
  func.func @transform_2(%arg0: i32) -> (i32, i32) {
    %c0_i32 = arith.constant 0 : i32
    %c0_i32_0 = arith.constant 0 : i32
    return %arg0, %c0_i32 : i32, i32
  }
  func.func @transform_3(%arg0: i32) -> (i32, i32) {
    %c0_i32 = arith.constant 0 : i32
    %c0_i32_0 = arith.constant 0 : i32
    %c0_i32_1 = arith.constant 0 : i32
    return %c0_i32, %c0_i32_0 : i32, i32
  }
  func.func @transform_4(%arg0: i32) -> (i32, i32) {
    %c0_i32 = arith.constant 0 : i32
    %c0_i32_0 = arith.constant 0 : i32
    %c0_i32_1 = arith.constant 0 : i32
    return %c0_i32, %c0_i32_0 : i32, i32
  }
  func.func @transform_5(%arg0: i32) -> (i32, i32) {
    %c0_i32 = arith.constant 0 : i32
    %c0_i32_0 = arith.constant 0 : i32
    %c0_i32_1 = arith.constant 0 : i32
    return %c0_i32, %c0_i32_0 : i32, i32
  }
  func.func @transform_6(%arg0: i32) -> (i32, i32) {
    %c0_i32 = arith.constant 0 : i32
    %c0_i32_0 = arith.constant 0 : i32
    return %arg0, %c0_i32 : i32, i32
  }
}

</mosaic_0001>

<bundles_post_ra>
// kernel: tpu_custom_call.1
= control target key start
LH: loop header
LB: loop body
LE: loop exit
PB: predicated region body
PF: predicated region fallthrough
CT: control target
= control target key end

     0   :  { %s1612_s0 = inlined_call_operand.hbm [shape: f32[16,16], index: 0, kind: input, shape index: {}]   ;;  %s1613_s1 = inlined_call_operand.hbm [shape: f32[32,17], index: 1, kind: input, shape index: {}]   ;;  %s1614_s2 = inlined_call_operand.hbm [shape: f32[32,32], index: 2, kind: input, shape index: {}]   ;;  %s1615_s3 = inlined_call_operand.hbm [shape: f32[17,128], index: 3, kind: input, shape index: {}]   ;;  %s1616_s4 = inlined_call_operand.hbm [shape: f32[32,128], index: 4, kind: input, shape index: {}]   ;;  %s1617_s5 = inlined_call_operand.hbm [shape: f32[1,128], index: 5, kind: input, shape index: {}]   ;;  %s1618_s6 = inlined_call_operand.hbm [shape: f32[32,128], index: 6, kind: output, shape index: {}]  }
   0x1   :  { %1638 = sst [smem:[#allocation26_spill]] %s1613_s1 }
   0x2   :  { %1639 = sst [smem:[#allocation27_spill]] %s1615_s3 }
   0x3   :  { %11 = vsyncpa [#allocation4], 0 }
   0x4   :  { %12 = vsyncpa [#allocation7], 0 }
   0x5   :  { %14 = vsyncpa [#allocation7 + $0x1], 0 }
   0x6   :  { %15 = vsyncpa [#allocation10], 0 }
   0x7   :  { %16 = vsyncpa [#allocation13], 0 }
   0x8   :  { %17 = vsyncpa [#allocation5], 0 }
   0x9   :  { %19 = vsyncpa [#allocation5 + $0x1], 0  ;;  %s1282_s21 = smov 0   ;;  %s1284_s22 = smov 0  }
   0xa   :  { %s1286_s23 = smov 0   ;;  %s1288_s24 = smov 0  }
   0xb LB: > { %1640 = sst [smem:[#allocation20_spill]] %s1222_s21  ;;  %s1303_s25 = sadd.s32 4294967295, %s1234_s24   ;;  %s1234_s24 = sphi %s1288_s24, %s1676_s24   ;;  %s1230_s23 = sphi %s1286_s23, %s1678_s23   ;;  %s1226_s22 = sphi %s1284_s22, %s1680_s22   ;;  %s1222_s21 = sphi %s1282_s21, %s1679_s21  }
   0xc   : > { %1641 = sst [smem:[#allocation21_spill]] %s1230_s23  ;;  %s791_s26 = sadd.s32 4294967294, %s1234_s24  }
   0xd   : > { %1642 = sst [smem:[#allocation22_spill]] %s1234_s24  ;;  %p66_p0 = scmp.ne.s32.totalorder %s1226_s22, %s1222_s21 }
   0xe   : > { %p1619_p1 = scmp.eq.s32.totalorder %s1303_s25, 0  ;;  %p185_p3 = scmp.eq.s32.totalorder %s791_s26, 1 }
   0xf   : > { %p792_p5 = scmp.ge.s32.totalorder %s1234_s24, 1  ;;  %p192_p7 = scmp.lt.s32.totalorder %s1234_s24, 3 }
  0x10   : > { %p1312_p4 = por %p1619_p1, %p66_p0  ;;  %p1317_p6 = por %p185_p3, %p66_p0 }
  0x11   : > { %p1322_p8 = pnand %p792_p5, %p192_p7  ;;  %s1236_s30 = smov [#allocation9]  }
  0x12   : > { %s1643_s27 = scalar_select %p1312_p4, 1, 0 }
  0x13   : > { %s1644_s28 = scalar_select %p1317_p6, 1, 0 }
  0x14   : > { %s1646_s29 = scalar_select %p1322_p8, 1, 0 }
  0x15   : > { %1645 = sst [smem:[#allocation23_spill]] %s1644_s28  ;;  %p910_p10 = pneg %p1322_p8 }
  0x16   : > { %s217_s7 = sshll.u32 %s1236_s30, 4  ;;  %s1336_s9 = sadd.s32 1, %s1234_s24   ;;  %s218_s7 = int_to_ptr.vmem [resolvable:$true] %s217_s7 }
  0x17   : > { %p1331_p11 = pnand %p910_p10, %p1619_p1  ;;  %1648 = sst [smem:[#allocation24_spill]] %s1336_s9 }
  0x18   : > { %s53_s10 = sadd.s32 1, %s1230_s23  ;;  %s50_s11 = ssub.s32 %s1234_s24, %s1336_s9 }
  0x19   : > { %s1647_s8 = scalar_select %p1331_p11, 1, 0 }
  0x1a   : > { %s1649_s3 = sld [smem:[#allocation27_spill]]  ;;  %p1349_p13 = pneg %p1331_p11 }
  0x20   : > { %s984_s14 = scalar_lea.hbm %s1649_s3, 384 }
  0x21   : > { %p985_p12 = scmp.ne.s32.totalorder %s1649_s3, %s984_s14  ;;  %p991_p5 = scmp.lt.u32.totalorder %s984_s14, %s1649_s3 }
  0x23   : > { %p987_p0 = pnand %p1349_p13, %p985_p12 }
  0x25   : > { %p988_p3 = pneg %p987_p0 }
  0x27   : > { %p993_p7 = pnand %p991_p5, %p988_p3 }
  0x29   : > { %996 = shalt.err (!%p993_p7)
}
  0x2a   : > { %s997_s20 = scalar_lea.vmem %s218_s7, 384  ;;  %p1005_p2 = scmp.lt.s32.totalorder %s218_s7, %s218_s7 }
  0x2b   : > { %p998_p10 = scmp.ne.s32.totalorder %s218_s7, %s997_s20  ;;  %p1006_p6 = scmp.lt.s32.totalorder %s997_s20, %s997_s20 }
  0x2d   : > { %p1000_p9 = pnand %p998_p10, %p1349_p13  ;;  %p1007_p4 = por %p1006_p6, %p1005_p2 }
  0x2f   : > { %p1001_p1 = pneg %p1000_p9 }
  0x31   : > { %p1008_p8 = pnand %p1007_p4, %p1001_p1 }
  0x33   : > { %1011 = shalt.err (!%p1008_p8)
}
  0x34   : > { %s1622_s26 = smov 128   ;;  %s1624_s30 = smov 8  }
  0x35   : > { %916 = dma.hbm_to_vmem [thread:$0]  (!%p1331_p11), %s1649_s3, 384, %s218_s7, [#allocation10], %s1622_s26, %s1622_s26, %s1624_s30  }
  0x36   : > { %p51_p1 = scmp.eq.s32.totalorder %s50_s11, 0  ;;  %p60_p2 = scmp.ne.s32.totalorder %s1230_s23, %s1226_s22 }
  0x37   : > { %p61_p4 = scmp.eq.s32.totalorder %s1234_s24, 0  ;;  %p938_p6 = scmp.lt.s32.totalorder %s1234_s24, 2 }
  0x38   : > { %s1373_s14 = scalar_select %p51_p1, %s1230_s23, %s53_s10  }
  0x39   : > { %p62_p8 = por %p61_p4, %p60_p2  ;;  %p1652_p9 = scmp.eq.s32.totalorder %s1303_s25, 1 }
  0x3a   : > { %1651 = sst [smem:[#allocation25_spill]] %s1373_s14  ;;  %s255_s16 = sand.u32 1, %s1234_s24  }
  0x3b   : > { %p1377_p12 = por %p1652_p9, %p60_p2  ;;  %s257_s18 = sand.u32 1, %s1230_s23  }
  0x3c   : > { %s1383_s19 = sshll.u32 %s257_s18, 4  ;;  %s825_s20 = sshll.u32 %s1234_s24, 8 }
  0x3d   : > { %s1653_s15 = scalar_select %p1377_p12, 1, 0 }
  0x3e   : > { %s1654_s1 = sld [smem:[#allocation26_spill]]  ;;  %s259_s10 = scalar_lea.vmem [#allocation6], %s1383_s19 }
  0x3f   : > { %s266_s13 = sshll.u32 %s259_s10, 4  ;;  %p1394_p0 = pnand %p938_p6, %p62_p8  ;;  %s1392_s13 = int_to_ptr.vmem [resolvable:$true] %s266_s13 }
  0x40   : > { %s1401_s12 = scalar_lea.hbm %s1614_s2, %s825_s20  ;;  %s1403_s7 = scalar_lea.sflag [#allocation7], %s255_s16 }
  0x41   : > { %s1655_s26 = scalar_select %p1394_p0, 1, 0 }
  0x42   : > { %p1635_p5 = pneg %p1394_p0 }
  0x44   : > { %s1389_s11 = scalar_lea.hbm %s1654_s1, %s825_s20  ;;  %s1017_s23 = scalar_lea.hbm %s1654_s1, 512 }
  0x45   : > { %s1012_s3 = scalar_lea.hbm %s1389_s11, 256  ;;  %p1018_p1 = scmp.lt.u32.totalorder %s1389_s11, %s1654_s1 }
  0x46   : > { %p1013_p3 = scmp.ne.s32.totalorder %s1389_s11, %s1012_s3  ;;  %p1019_p2 = scmp.lt.u32.totalorder %s1017_s23, %s1012_s3 }
  0x47   : > { %p1021_p6 = scmp.lt.u32.totalorder %s1012_s3, %s1389_s11 }
  0x48   : > { %p1015_p7 = pnand %p1635_p5, %p1013_p3  ;;  %p1020_p4 = por %p1019_p2, %p1018_p1 }
  0x4a   : > { %p1016_p10 = pneg %p1015_p7  ;;  %p1022_p8 = por %p1021_p6, %p1020_p4 }
  0x4c   : > { %p1023_p9 = pnand %p1022_p8, %p1016_p10 }
  0x4e   : > { %1026 = shalt.err (!%p1023_p9)
}
  0x4f   : > { %s1027_s16 = scalar_lea.vmem %s1392_s13, 256  ;;  %s1239_s14 = smov [#allocation6]  }
  0x50   : > { %p1028_p3 = scmp.ne.s32.totalorder %s1392_s13, %s1027_s16  ;;  %s1032_s20 = sshll.u32 %s1239_s14, 4  ;;  %s1033_s20 = int_to_ptr.vmem [resolvable:$false] %s1032_s20 }
  0x51   : > { %s1034_s9 = scalar_lea.vmem %s1033_s20, 512  ;;  %p1035_p11 = scmp.lt.s32.totalorder %s1392_s13, %s1033_s20 }
  0x52   : > { %p1030_p7 = pnand %p1028_p3, %p1635_p5  ;;  %p1036_p1 = scmp.lt.s32.totalorder %s1034_s9, %s1027_s16 }
  0x54   : > { %p1031_p12 = pneg %p1030_p7  ;;  %p1037_p2 = por %p1036_p1, %p1035_p11 }
  0x56   : > { %p1038_p4 = pnand %p1037_p2, %p1031_p12 }
  0x58   : > { %1041 = shalt.err (!%p1038_p4)
}
  0x59   : > { %s1656_s3 = smov 8   ;;  %s1657_s23 = smov 128  }
  0x5a   : > { %926 = dma.hbm_to_vmem [thread:$0]  (!%p1394_p0), %s1389_s11, 256, %s1392_s13, %s1403_s7, %s1657_s23, %s1657_s23, %s1656_s3  }
  0x5b   : > { %s280_s18 = scalar_lea.vmem [#allocation8], %s1383_s19  ;;  %s1240_s30 = smov [#allocation3]  }
  0x5c   : > { %s1435_s10 = sshll.u32 %s280_s18, 4  ;;  %s204_s14 = sshll.u32 %s1240_s30, 4  ;;  %s205_s14 = int_to_ptr.vmem [resolvable:$true] %s204_s14  ;;  %s1480_s10 = int_to_ptr.vmem [resolvable:$true] %s1435_s10 }
  0x5d   : > { %s1241_s16 = smov [#allocation11]   ;;  %s1042_s24 = scalar_lea.hbm %s1612_s0, 256 }
  0x5e   : > { %s230_s20 = sshll.u32 %s1241_s16, 4  ;;  %p1043_p11 = scmp.ne.s32.totalorder %s1612_s0, %s1042_s24  ;;  %s231_s20 = int_to_ptr.vmem [resolvable:$true] %s230_s20 }
  0x5f   : > { %p1049_p6 = scmp.lt.u32.totalorder %s1042_s24, %s1612_s0 }
  0x60   : > { %p1045_p12 = pnand %p1043_p11, %p1349_p13 }
  0x62   : > { %p1046_p10 = pneg %p1045_p12 }
  0x64   : > { %p1051_p8 = pnand %p1049_p6, %p1046_p10 }
  0x66   : > { %1054 = shalt.err (!%p1051_p8)
}
  0x67   : > { %s1055_s13 = scalar_lea.vmem %s205_s14, 256  ;;  %p1063_p1 = scmp.lt.s32.totalorder %s205_s14, %s205_s14 }
  0x68   : > { %p1056_p9 = scmp.ne.s32.totalorder %s205_s14, %s1055_s13  ;;  %p1064_p2 = scmp.lt.s32.totalorder %s1055_s13, %s1055_s13 }
  0x6a   : > { %p1058_p3 = pnand %p1056_p9, %p1349_p13  ;;  %p1065_p4 = por %p1064_p2, %p1063_p1 }
  0x6c   : > { %p1059_p7 = pneg %p1058_p3 }
  0x6e   : > { %p1066_p5 = pnand %p1065_p4, %p1059_p7 }
  0x70   : > { %1069 = shalt.err (!%p1066_p5)
}
  0x71   : > { %p1658_p11 = scmp.ne.s32.totalorder %s1647_s8, 0  ;;  %s1070_s18 = scalar_lea.hbm %s1616_s4, 512 }
  0x72   : > { %p1071_p12 = scmp.ne.s32.totalorder %s1616_s4, %s1070_s18  ;;  %p1077_p6 = scmp.lt.u32.totalorder %s1070_s18, %s1616_s4 }
  0x73   : > { %913 = dma.hbm_to_vmem [thread:$0]  (!%p1658_p11), %s1612_s0, 256, %s205_s14, [#allocation4], %s1657_s23, %s1657_s23, %s1656_s3  }
  0x74   : > { %p1073_p5 = pnand %p1071_p12, %p1349_p13 }
  0x76   : > { %p1074_p10 = pneg %p1073_p5 }
  0x78   : > { %p1079_p8 = pnand %p1077_p6, %p1074_p10 }
  0x7a   : > { %1082 = shalt.err (!%p1079_p8)
}
  0x7b   : > { %s1083_s19 = scalar_lea.vmem %s231_s20, 512  ;;  %p1091_p1 = scmp.lt.s32.totalorder %s231_s20, %s231_s20 }
  0x7c   : > { %p1084_p9 = scmp.ne.s32.totalorder %s231_s20, %s1083_s19  ;;  %p1092_p2 = scmp.lt.s32.totalorder %s1083_s19, %s1083_s19 }
  0x7e   : > { %p1086_p3 = pnand %p1084_p9, %p1349_p13  ;;  %p1093_p4 = por %p1092_p2, %p1091_p1 }
  0x80   : > { %p1087_p7 = pneg %p1086_p3 }
  0x82   : > { %p1094_p0 = pnand %p1093_p4, %p1087_p7 }
  0x84   : > { %1097 = shalt.err (!%p1094_p0)
}
  0x85   : > { %919 = dma.hbm_to_vmem [thread:$0]  (!%p1658_p11), %s1616_s4, 512, %s231_s20, [#allocation10], %s1657_s23, %s1657_s23, %s1656_s3  }
  0x86   : > { %s1242_s1 = smov [#allocation12]   ;;  %s1098_s18 = scalar_lea.hbm %s1617_s5, 16 }
  0x87   : > { %s244_s21 = sshll.u32 %s1242_s1, 4  ;;  %p1099_p0 = scmp.ne.s32.totalorder %s1617_s5, %s1098_s18  ;;  %s245_s21 = int_to_ptr.vmem [resolvable:$true] %s244_s21 }
  0x88   : > { %p1105_p10 = scmp.lt.u32.totalorder %s1098_s18, %s1617_s5 }
  0x89   : > { %p1101_p12 = pnand %p1099_p0, %p1349_p13 }
  0x8b   : > { %p1102_p5 = pneg %p1101_p12 }
  0x8d   : > { %p1107_p6 = pnand %p1105_p10, %p1102_p5 }
  0x8f   : > { %1110 = shalt.err (!%p1107_p6)
}
  0x90   : > { %s1111_s20 = scalar_lea.vmem %s245_s21, 16  ;;  %s1118_s19 = scalar_lea.vmem %s245_s21, 32 }
  0x91   : > { %p1112_p8 = scmp.ne.s32.totalorder %s245_s21, %s1111_s20  ;;  %p1119_p7 = scmp.lt.s32.totalorder %s245_s21, %s245_s21 }
  0x92   : > { %p1120_p1 = scmp.lt.s32.totalorder %s1118_s19, %s1111_s20 }
  0x93   : > { %p1114_p9 = pnand %p1112_p8, %p1349_p13 }
  0x94   : > { %p1121_p2 = por %p1120_p1, %p1119_p7 }
  0x95   : > { %p1115_p3 = pneg %p1114_p9 }
  0x97   : > { %p1122_p4 = pnand %p1121_p2, %p1115_p3 }
  0x99   : > { %1125 = shalt.err (!%p1122_p4)
}
  0x9a   : > { %922 = dma.hbm_to_vmem [thread:$0]  (!%p1658_p11), %s1617_s5, 16, %s245_s21, [#allocation13]  }
  0x9b   : > { %s1126_s17 = scalar_lea.hbm %s1401_s12, 256  ;;  %p1659_p0 = scmp.ne.s32.totalorder %s1655_s26, 0 }
  0x9c   : > { %p1127_p13 = scmp.ne.s32.totalorder %s1401_s12, %s1126_s17  ;;  %s1131_s28 = scalar_lea.hbm %s1614_s2, 512 }
  0x9d   : > { %p1660_p12 = pneg %p1659_p0  ;;  %p1132_p6 = scmp.lt.u32.totalorder %s1401_s12, %s1614_s2 }
  0x9e   : > { %p1133_p8 = scmp.lt.u32.totalorder %s1131_s28, %s1126_s17  ;;  %p1135_p3 = scmp.lt.u32.totalorder %s1126_s17, %s1401_s12 }
  0x9f   : > { %p1129_p5 = pnand %p1127_p13, %p1660_p12 }
  0xa0   : > { %p1134_p9 = por %p1133_p8, %p1132_p6 }
  0xa1   : > { %p1130_p10 = pneg %p1129_p5 }
  0xa2   : > { %p1136_p7 = por %p1135_p3, %p1134_p9 }
  0xa4   : > { %p1137_p1 = pnand %p1136_p7, %p1130_p10 }
  0xa6   : > { %1140 = shalt.err (!%p1137_p1)
}
  0xa7   : > { %s1141_s21 = scalar_lea.vmem %s1480_s10, 256  ;;  %p1661_p2 = pmov %p1660_p12 }
  0xa8   : > { %p1142_p11 = scmp.ne.s32.totalorder %s1480_s10, %s1141_s21  ;;  %s1243_s30 = smov [#allocation8]  }
  0xa9   : > { %s1146_s16 = sshll.u32 %s1243_s30, 4  ;;  %s1147_s16 = int_to_ptr.vmem [resolvable:$false] %s1146_s16 }
  0xaa   : > { %p1144_p4 = pnand %p1142_p11, %p1661_p2  ;;  %s1148_s9 = scalar_lea.vmem %s1147_s16, 512 }
  0xab   : > { %p1149_p12 = scmp.lt.s32.totalorder %s1480_s10, %s1147_s16  ;;  %p1150_p5 = scmp.lt.s32.totalorder %s1148_s9, %s1141_s21 }
  0xac   : > { %p1145_p13 = pneg %p1144_p4 }
  0xad   : > { %p1151_p6 = por %p1150_p5, %p1149_p12 }
  0xaf   : > { %p1152_p8 = pnand %p1151_p6, %p1145_p13 }
  0xb1   : > { %1155 = shalt.err (!%p1152_p8)
}
  0xb2   : > { %929 = dma.hbm_to_vmem [thread:$0]  (!%p1659_p0), %s1401_s12, 256, %s1480_s10, %s1403_s7, %s1657_s23, %s1657_s23, %s1656_s3  }
  0xb3   : > { %p1662_p10 = scmp.ne.s32.totalorder %s1646_s29, 0 }
  0xb4   : > { %p1663_p9 = scmp.eq.s32.totalorder (!%p1662_p10), %s1303_s25, 0 }
  0xb5   : > { %299 = sbr.rel (%p1662_p10) target bundleno = 662 (0x296), region = 44 }
  0xbc   : > { %1201 = dma.done.wait (%p1663_p9), [#allocation4], 256   ;;  %p1664_p3 = pmov %p1663_p9 }
  0xbd   : > { %s305_s26 = sand.u32 1, %s1303_s25   ;;  %s307_s11 = sand.u32 1, %s1226_s22  }
  0xbe   : > { %1203 = vsyncadd (%p1664_p3), [#allocation4], 4294967040  ;;  %s1537_s20 = sshll.u32 %s307_s11, 4  ;;  %s306_s12 = scalar_lea.sflag [#allocation7], %s305_s26 }
  0xbf   : > { %s309_s7 = scalar_lea.vmem [#allocation6], %s1537_s20  ;;  %p1665_p0 = scmp.ne.s32.totalorder %s1643_s27, 0 }
  0xc1   : > { %1205 = dma.done.wait (%p1665_p0), %s306_s12, 512  }
  0xc2   : > { %1207 = vsyncadd (%p1665_p0), %s306_s12, 4294966784  ;;  %s318_s29 = scalar_lea.vmem [#allocation8], %s1537_s20  ;;  %p1666_p7 = pmov %p1664_p3 }
  0xc3   : > { %p1667_p1 = pmov %p1664_p3 }
  0xc4   : > { %1209 = dma.done.wait (%p1666_p7), [#allocation10], 896  }
  0xc5   : > { %1211 = vsyncadd (%p1667_p1), [#allocation10], 4294966400  ;;  %p1668_p11 = pmov %p1667_p1 }
  0xc6   : > { %p1669_p2 = pmov %p1667_p1 }
  0xc7   : > { %1213 = dma.done.wait (%p1668_p11), [#allocation13], 16  }
  0xc8   : > { %1215 = vsyncadd (%p1669_p2), [#allocation13], 4294967280  ;;  %v374_v0 = vld [vmem:[#allocation11] sm:$0xff]  ;;  %v375_v1 = vld [vmem:[#allocation11 + $0x8] sm:$0xff]  ;;  %vm460_vm0 = vcmask 138240   ;;  %vm467_vm1 = vcmask 1040384  }
  0xc9   : > { %v369_v2 = vld [vmem:[#allocation9] sm:$0xff]  ;;  %v870_v3 = vpack.c.bf16 %v375_v1, %v374_v0  ;;  %v370_v4 = vld [vmem:[#allocation9 + $0x8] sm:$0xff]  ;;  %v377_v6 = vld [vmem:[#allocation11 + $0x18] sm:$0xff]  ;;  %vm378_vm2 = vcmask 261120   ;;  %vm559_vm3 = vcmask 130048   ;;  %s363_s27 = scalar_lea.vmem [#allocation14], %s1537_s20 }
  0xca   : > { %v376_v5 = vld [vmem:[#allocation11 + $0x10] sm:$0xff]  ;;  %v878_v7 = vpack.c.bf16 %v370_v4, %v369_v2  ;;  %v367_v9 = vld [vmem:[%s309_s7] sm:$0xff]  ;;  %v549_v22 = vld [vmem:[#allocation3 + $0x8] sm:$0xff]  ;;  %s657_s3 = sshll.u32 %s363_s27, 4  ;;  %s827_s23 = sshll.u32 %s1303_s25, 8  ;;  %s1561_s3 = int_to_ptr.vmem [resolvable:$true] %s657_s3 }
  0xcb   : > { %v874_v8 = vpack.c.bf16 %v377_v6, %v376_v5  ;;  %871 = vmatprep.subr.bf16.mxu0 %v870_v3  ;;  %v371_v10 = vld [vmem:[#allocation9 + $0x10] sm:$0x1]  ;;  %860 = vmatprep.mubr.msk.f32.mxu1 %vm460_vm0, %v367_v9  ;;  %v368_v12 = vld [vmem:[%s309_s7 + $0x8] sm:$0xff]  ;;  %s1566_s14 = scalar_lea.hbm %s1618_s6, %s827_s23  ;;  %s1570_s13 = scalar_lea.sflag [#allocation5], %s307_s11 }
  0xcc   : > { %v372_v11 = vld [vmem:[%s318_s29] sm:$0xff]  ;;  %873 = vmatpush3.bf16.msra.mxu0 %v870_v3  ;;  %879 = vmatprep.subr.bf16.mxu1 %v878_v7  ;;  %v373_v13 = vld [vmem:[%s318_s29 + $0x8] sm:$0xff]  ;;  %s1156_s25 = scalar_lea.vmem %s1561_s3, 256  ;;  %p1670_p13 = scmp.ne.s32.totalorder %s1653_s15, 0 }
  0xcd   : > { %881 = vmatpush3.bf16.msra.mxu1 %v878_v7  ;;  %875 = vmatprep.subr.bf16.mxu0 %v874_v8  ;;  %v548_v14 = vld [vmem:[#allocation3] sm:$0xff]  ;;  %v817_v23 = vld [vmem:[#allocation12] ss:$0 sm:$0xff]  ;;  %p1157_p4 = scmp.ne.s32.totalorder %s1561_s3, %s1156_s25  ;;  %s1244_s17 = smov [#allocation14]  }
  0xce   : > { %858 = vmatprep.subr.msk.mxu1 %vm467_vm1, %v371_v10  ;;  %851 = vmatprep.mubr.msk.f32.mxu0 %vm378_vm2, %v372_v11  ;;  %s1160_s1 = sshll.u32 %s1244_s17, 4  ;;  %s1161_s1 = int_to_ptr.vmem [resolvable:$false] %s1160_s1 }
  0xcf   : > { %p1158_p12 = pnand %p1157_p4, %p1670_p13  ;;  %s1162_s24 = scalar_lea.vmem %s1161_s1, 512 }
  0xd0   : > { %877 = vmatpush3.bf16.msra.mxu0 %v874_v8  ;;  %p1163_p6 = scmp.lt.s32.totalorder %s1561_s3, %s1161_s1  ;;  %p1164_p8 = scmp.lt.s32.totalorder %s1162_s24, %s1156_s25 }
  0xd1   : > { %859 = vmatpush3.msk.msra.mxu1 %vm467_vm1, %v371_v10  ;;  %p1159_p5 = pneg %p1158_p12 }
  0xd2   : > { %861 = vmatmul.mubr.msk.f32.vlgmr.msra.gmra.mrb[0].mxu1 %vm460_vm0, %v368_v12  ;;  %p1165_p10 = por %p1164_p8, %p1163_p6 }
  0xd3   : > { %852 = vmatmul.mubr.msk.f32.vlgmr.msra.gmra.mrb[0].mxu0 %vm378_vm2, %v373_v13  ;;  %867 = vmatprep.mubr.msk.f32.mxu1 %vm559_vm3, %v548_v14 }
  0xd4   : > { %p1166_p9 = pnand %p1165_p10, %p1159_p5 }
 0x1a5   : > { %v862_v15 = vpop.f32.mrb[0].mxu1 }
 0x1a6   : > { %v853_v16 = vpop.f32.mrb[0].mxu0  ;;  %v537_v17 = vpop.f32.mrb[1].mxu1 }
 0x1a7   : > { %v543_v18 = vadd.f32 %v862_v15, %v853_v16  ;;  %v451_v19 = vpop.f32.mrb[1].mxu0 }
 0x1a8   : > { %v538_v20 = vadd.f32 %v537_v17, %v451_v19 }
 0x1aa   : > { %v882_v21 = vpack.c.bf16 %v543_v18, %v538_v20 }
 0x1ac   : > { %883 = vmatprep.subr.bf16.mxu1 %v882_v21 }
 0x1ad   : > { %885 = vmatpush3.bf16.msra.mxu1 %v882_v21 }
 0x1b0   : > { %868 = vmatmul.mubr.msk.f32.vlgmr.msra.gmra.mrb[2].mxu1 %vm559_vm3, %v549_v22 }
 0x283   : > { %v869_v24 = vpop.f32.mrb[2].mxu1 }
 0x284   : > { %v638_v25 = vadd.f32 %v869_v24, %v817_v23  ;;  %v632_v26 = vpop.f32.mrb[3].mxu1 }
 0x285   : > { %v633_v27 = vadd.f32 %v817_v23, %v632_v26 }
 0x286   : > { %642 = vst [vmem:[%s363_s27 + $0x8] sm:$0xff] %v638_v25 }
 0x287   : > { %641 = vst [vmem:[%s363_s27] sm:$0xff] %v633_v27 }
 0x288   : > { %1169 = shalt.err (!%p1166_p9)
}
 0x289   : > { %s1170_s28 = scalar_lea.hbm %s1566_s14, 256  ;;  %s1174_s21 = scalar_lea.hbm %s1618_s6, 512 }
 0x28a   : > { %p1171_p3 = scmp.ne.s32.totalorder %s1566_s14, %s1170_s28  ;;  %p1175_p1 = scmp.lt.u32.totalorder %s1566_s14, %s1618_s6 }
 0x28b   : > { %p1176_p11 = scmp.lt.u32.totalorder %s1174_s21, %s1170_s28  ;;  %p1178_p4 = scmp.lt.u32.totalorder %s1170_s28, %s1566_s14 }
 0x28c   : > { %p1172_p0 = pnand %p1171_p3, %p1670_p13 }
 0x28d   : > { %p1177_p2 = por %p1176_p11, %p1175_p1 }
 0x28e   : > { %p1173_p7 = pneg %p1172_p0 }
 0x28f   : > { %p1179_p12 = por %p1178_p4, %p1177_p2 }
 0x291   : > { %p1180_p5 = pnand %p1179_p12, %p1173_p7 }
 0x293   : > { %1183 = shalt.err (!%p1180_p5)
}
 0x294   : > { %s1245_s9 = smov 128   ;;  %s1246_s26 = smov 8  }
 0x295   : > { %908 = dma.vmem_to_hbm [thread:$0]  (%p1670_p13), %s1561_s3, 256, %s1566_s14, %s1570_s13, %s1245_s9, %s1245_s9, %s1246_s26  }
 0x296 PF: > { %s1671_s11 = sld [smem:[#allocation20_spill]]  ;;  %s1672_s20 = sld [smem:[#allocation23_spill]] }
 0x297   : > { %s1673_s12 = sld [smem:[#allocation22_spill]] }
 0x29c   : > { %s672_s7 = sand.u32 1, %s1671_s11   ;;  %p1674_p6 = scmp.ne.s32.totalorder %s1672_s20, 0 }
 0x29d   : > { %p1675_p8 = scmp.ge.s32.totalorder %s1673_s12, 2  ;;  %s673_s29 = scalar_lea.sflag [#allocation5], %s672_s7 }
 0x29f   : > { %p931_p10 = pnand %p1675_p8, %p1674_p6 }
 0x2a1   : > { %1217 = dma.done.wait (!%p931_p10), %s673_s29, 256  }
 0x2a2   : > { %1219 = vsyncadd (!%p931_p10), %s673_s29, 4294967040  ;;  %s1676_s24 = sld [smem:[#allocation24_spill]]  ;;  %s1677_s27 = sld [smem:[#allocation21_spill]] }
 0x2a3   : > { %s1678_s23 = sld [smem:[#allocation25_spill]]  ;;  %s1679_s21 = smov %s1226_s22 }
 0x2a8   : > { %p22_p9 = scmp.ge.s32.totalorder %s1676_s24, 4   ;;  %s1680_s22 = smov %s1677_s27 }
 0x2aa   :  { %24 = sbr.rel (!%p22_p9) target bundleno = 11 (0xb), region = 117 }
 0x2b1   :  { %678 = vsyncpa [#allocation4], 1 }
 0x2b2   :  { %680 = vsyncpa [#allocation4 + $0x1], 1 }
 0x2b3   :  { %681 = vsyncpa [#allocation7], 1 }
 0x2b4   :  { %683 = vsyncpa [#allocation7 + $0x1], 1 }
 0x2b5   :  { %684 = vsyncpa [#allocation10], 1 }
 0x2b6   :  { %685 = vsyncpa [#allocation13], 1 }
 0x2b7   :  { %686 = vsyncpa [#allocation5], 1 }
 0x2b8   :  { %688 = vsyncpa [#allocation5 + $0x1], 1 }

// kernel: tpu_custom_call.1
= control target key start
LH: loop header
LB: loop body
LE: loop exit
PB: predicated region body
PF: predicated region fallthrough
CT: control target
= control target key end

     0   :  { %s1612_s0 = inlined_call_operand.hbm [shape: f32[16,16], index: 0, kind: input, shape index: {}]   ;;  %s1613_s1 = inlined_call_operand.hbm [shape: f32[32,17], index: 1, kind: input, shape index: {}]   ;;  %s1614_s2 = inlined_call_operand.hbm [shape: f32[32,32], index: 2, kind: input, shape index: {}]   ;;  %s1615_s3 = inlined_call_operand.hbm [shape: f32[17,128], index: 3, kind: input, shape index: {}]   ;;  %s1616_s4 = inlined_call_operand.hbm [shape: f32[32,128], index: 4, kind: input, shape index: {}]   ;;  %s1617_s5 = inlined_call_operand.hbm [shape: f32[1,128], index: 5, kind: input, shape index: {}]   ;;  %s1618_s6 = inlined_call_operand.hbm [shape: f32[32,128], index: 6, kind: output, shape index: {}]  }
   0x1   :  { %1638 = sst [smem:[#allocation26_spill]] %s1613_s1 }
   0x2   :  { %1639 = sst [smem:[#allocation27_spill]] %s1615_s3 }
   0x3   :  { %11 = vsyncpa [#allocation4], 0 }
   0x4   :  { %12 = vsyncpa [#allocation7], 0 }
   0x5   :  { %14 = vsyncpa [#allocation7 + $0x1], 0 }
   0x6   :  { %15 = vsyncpa [#allocation10], 0 }
   0x7   :  { %16 = vsyncpa [#allocation13], 0 }
   0x8   :  { %17 = vsyncpa [#allocation5], 0 }
   0x9   :  { %19 = vsyncpa [#allocation5 + $0x1], 0  ;;  %s1282_s21 = smov 0   ;;  %s1284_s22 = smov 0  }
   0xa   :  { %s1286_s23 = smov 0   ;;  %s1288_s24 = smov 0  }
   0xb LB: > { %1640 = sst [smem:[#allocation20_spill]] %s1222_s21  ;;  %s1303_s25 = sadd.s32 4294967295, %s1234_s24   ;;  %s1234_s24 = sphi %s1288_s24, %s1676_s24   ;;  %s1230_s23 = sphi %s1286_s23, %s1678_s23   ;;  %s1226_s22 = sphi %s1284_s22, %s1680_s22   ;;  %s1222_s21 = sphi %s1282_s21, %s1679_s21  }
   0xc   : > { %1641 = sst [smem:[#allocation21_spill]] %s1230_s23  ;;  %s791_s26 = sadd.s32 4294967294, %s1234_s24  }
   0xd   : > { %1642 = sst [smem:[#allocation22_spill]] %s1234_s24  ;;  %p66_p0 = scmp.ne.s32.totalorder %s1226_s22, %s1222_s21 }
   0xe   : > { %p1619_p1 = scmp.eq.s32.totalorder %s1303_s25, 0  ;;  %p185_p3 = scmp.eq.s32.totalorder %s791_s26, 1 }
   0xf   : > { %p792_p5 = scmp.ge.s32.totalorder %s1234_s24, 1  ;;  %p192_p7 = scmp.lt.s32.totalorder %s1234_s24, 3 }
  0x10   : > { %p1312_p4 = por %p1619_p1, %p66_p0  ;;  %p1317_p6 = por %p185_p3, %p66_p0 }
  0x11   : > { %p1322_p8 = pnand %p792_p5, %p192_p7  ;;  %s1236_s30 = smov [#allocation9]  }
  0x12   : > { %s1643_s27 = scalar_select %p1312_p4, 1, 0 }
  0x13   : > { %s1644_s28 = scalar_select %p1317_p6, 1, 0 }
  0x14   : > { %s1646_s29 = scalar_select %p1322_p8, 1, 0 }
  0x15   : > { %1645 = sst [smem:[#allocation23_spill]] %s1644_s28  ;;  %p910_p10 = pneg %p1322_p8 }
  0x16   : > { %s217_s7 = sshll.u32 %s1236_s30, 4  ;;  %s1336_s9 = sadd.s32 1, %s1234_s24   ;;  %s218_s7 = int_to_ptr.vmem [resolvable:$true] %s217_s7 }
  0x17   : > { %p1331_p11 = pnand %p910_p10, %p1619_p1  ;;  %1648 = sst [smem:[#allocation24_spill]] %s1336_s9 }
  0x18   : > { %s53_s10 = sadd.s32 1, %s1230_s23  ;;  %s50_s11 = ssub.s32 %s1234_s24, %s1336_s9 }
  0x19   : > { %s1647_s8 = scalar_select %p1331_p11, 1, 0 }
  0x1a   : > { %s1649_s3 = sld [smem:[#allocation27_spill]]  ;;  %p1349_p13 = pneg %p1331_p11 }
  0x20   : > { %s984_s14 = scalar_lea.hbm %s1649_s3, 384 }
  0x21   : > { %p985_p12 = scmp.ne.s32.totalorder %s1649_s3, %s984_s14  ;;  %p991_p5 = scmp.lt.u32.totalorder %s984_s14, %s1649_s3 }
  0x23   : > { %p987_p0 = pnand %p1349_p13, %p985_p12 }
  0x25   : > { %p988_p3 = pneg %p987_p0 }
  0x27   : > { %p993_p7 = pnand %p991_p5, %p988_p3 }
  0x29   : > { %996 = shalt.err (!%p993_p7)
}
  0x2a   : > { %s997_s20 = scalar_lea.vmem %s218_s7, 384  ;;  %p1005_p2 = scmp.lt.s32.totalorder %s218_s7, %s218_s7 }
  0x2b   : > { %p998_p10 = scmp.ne.s32.totalorder %s218_s7, %s997_s20  ;;  %p1006_p6 = scmp.lt.s32.totalorder %s997_s20, %s997_s20 }
  0x2d   : > { %p1000_p9 = pnand %p998_p10, %p1349_p13  ;;  %p1007_p4 = por %p1006_p6, %p1005_p2 }
  0x2f   : > { %p1001_p1 = pneg %p1000_p9 }
  0x31   : > { %p1008_p8 = pnand %p1007_p4, %p1001_p1 }
  0x33   : > { %1011 = shalt.err (!%p1008_p8)
}
  0x34   : > { %s1622_s26 = smov 128   ;;  %s1624_s30 = smov 8  }
  0x35   : > { %916 = dma.hbm_to_vmem [thread:$0]  (!%p1331_p11), %s1649_s3, 384, %s218_s7, [#allocation10], %s1622_s26, %s1622_s26, %s1624_s30  }
  0x36   : > { %p51_p1 = scmp.eq.s32.totalorder %s50_s11, 0  ;;  %p60_p2 = scmp.ne.s32.totalorder %s1230_s23, %s1226_s22 }
  0x37   : > { %p61_p4 = scmp.eq.s32.totalorder %s1234_s24, 0  ;;  %p938_p6 = scmp.lt.s32.totalorder %s1234_s24, 2 }
  0x38   : > { %s1373_s14 = scalar_select %p51_p1, %s1230_s23, %s53_s10  }
  0x39   : > { %p62_p8 = por %p61_p4, %p60_p2  ;;  %p1652_p9 = scmp.eq.s32.totalorder %s1303_s25, 1 }
  0x3a   : > { %1651 = sst [smem:[#allocation25_spill]] %s1373_s14  ;;  %s255_s16 = sand.u32 1, %s1234_s24  }
  0x3b   : > { %p1377_p12 = por %p1652_p9, %p60_p2  ;;  %s257_s18 = sand.u32 1, %s1230_s23  }
  0x3c   : > { %s1383_s19 = sshll.u32 %s257_s18, 4  ;;  %s825_s20 = sshll.u32 %s1234_s24, 8 }
  0x3d   : > { %s1653_s15 = scalar_select %p1377_p12, 1, 0 }
  0x3e   : > { %s1654_s1 = sld [smem:[#allocation26_spill]]  ;;  %s259_s10 = scalar_lea.vmem [#allocation6], %s1383_s19 }
  0x3f   : > { %s266_s13 = sshll.u32 %s259_s10, 4  ;;  %p1394_p0 = pnand %p938_p6, %p62_p8  ;;  %s1392_s13 = int_to_ptr.vmem [resolvable:$true] %s266_s13 }
  0x40   : > { %s1401_s12 = scalar_lea.hbm %s1614_s2, %s825_s20  ;;  %s1403_s7 = scalar_lea.sflag [#allocation7], %s255_s16 }
  0x41   : > { %s1655_s26 = scalar_select %p1394_p0, 1, 0 }
  0x42   : > { %p1635_p5 = pneg %p1394_p0 }
  0x44   : > { %s1389_s11 = scalar_lea.hbm %s1654_s1, %s825_s20  ;;  %s1017_s23 = scalar_lea.hbm %s1654_s1, 512 }
  0x45   : > { %s1012_s3 = scalar_lea.hbm %s1389_s11, 256  ;;  %p1018_p1 = scmp.lt.u32.totalorder %s1389_s11, %s1654_s1 }
  0x46   : > { %p1013_p3 = scmp.ne.s32.totalorder %s1389_s11, %s1012_s3  ;;  %p1019_p2 = scmp.lt.u32.totalorder %s1017_s23, %s1012_s3 }
  0x47   : > { %p1021_p6 = scmp.lt.u32.totalorder %s1012_s3, %s1389_s11 }
  0x48   : > { %p1015_p7 = pnand %p1635_p5, %p1013_p3  ;;  %p1020_p4 = por %p1019_p2, %p1018_p1 }
  0x4a   : > { %p1016_p10 = pneg %p1015_p7  ;;  %p1022_p8 = por %p1021_p6, %p1020_p4 }
  0x4c   : > { %p1023_p9 = pnand %p1022_p8, %p1016_p10 }
  0x4e   : > { %1026 = shalt.err (!%p1023_p9)
}
  0x4f   : > { %s1027_s16 = scalar_lea.vmem %s1392_s13, 256  ;;  %s1239_s14 = smov [#allocation6]  }
  0x50   : > { %p1028_p3 = scmp.ne.s32.totalorder %s1392_s13, %s1027_s16  ;;  %s1032_s20 = sshll.u32 %s1239_s14, 4  ;;  %s1033_s20 = int_to_ptr.vmem [resolvable:$false] %s1032_s20 }
  0x51   : > { %s1034_s9 = scalar_lea.vmem %s1033_s20, 512  ;;  %p1035_p11 = scmp.lt.s32.totalorder %s1392_s13, %s1033_s20 }
  0x52   : > { %p1030_p7 = pnand %p1028_p3, %p1635_p5  ;;  %p1036_p1 = scmp.lt.s32.totalorder %s1034_s9, %s1027_s16 }
  0x54   : > { %p1031_p12 = pneg %p1030_p7  ;;  %p1037_p2 = por %p1036_p1, %p1035_p11 }
  0x56   : > { %p1038_p4 = pnand %p1037_p2, %p1031_p12 }
  0x58   : > { %1041 = shalt.err (!%p1038_p4)
}
  0x59   : > { %s1656_s3 = smov 8   ;;  %s1657_s23 = smov 128  }
  0x5a   : > { %926 = dma.hbm_to_vmem [thread:$0]  (!%p1394_p0), %s1389_s11, 256, %s1392_s13, %s1403_s7, %s1657_s23, %s1657_s23, %s1656_s3  }
  0x5b   : > { %s280_s18 = scalar_lea.vmem [#allocation8], %s1383_s19  ;;  %s1240_s30 = smov [#allocation3]  }
  0x5c   : > { %s1435_s10 = sshll.u32 %s280_s18, 4  ;;  %s204_s14 = sshll.u32 %s1240_s30, 4  ;;  %s205_s14 = int_to_ptr.vmem [resolvable:$true] %s204_s14  ;;  %s1480_s10 = int_to_ptr.vmem [resolvable:$true] %s1435_s10 }
  0x5d   : > { %s1241_s16 = smov [#allocation11]   ;;  %s1042_s24 = scalar_lea.hbm %s1612_s0, 256 }
  0x5e   : > { %s230_s20 = sshll.u32 %s1241_s16, 4  ;;  %p1043_p11 = scmp.ne.s32.totalorder %s1612_s0, %s1042_s24  ;;  %s231_s20 = int_to_ptr.vmem [resolvable:$true] %s230_s20 }
  0x5f   : > { %p1049_p6 = scmp.lt.u32.totalorder %s1042_s24, %s1612_s0 }
  0x60   : > { %p1045_p12 = pnand %p1043_p11, %p1349_p13 }
  0x62   : > { %p1046_p10 = pneg %p1045_p12 }
  0x64   : > { %p1051_p8 = pnand %p1049_p6, %p1046_p10 }
  0x66   : > { %1054 = shalt.err (!%p1051_p8)
}
  0x67   : > { %s1055_s13 = scalar_lea.vmem %s205_s14, 256  ;;  %p1063_p1 = scmp.lt.s32.totalorder %s205_s14, %s205_s14 }
  0x68   : > { %p1056_p9 = scmp.ne.s32.totalorder %s205_s14, %s1055_s13  ;;  %p1064_p2 = scmp.lt.s32.totalorder %s1055_s13, %s1055_s13 }
  0x6a   : > { %p1058_p3 = pnand %p1056_p9, %p1349_p13  ;;  %p1065_p4 = por %p1064_p2, %p1063_p1 }
  0x6c   : > { %p1059_p7 = pneg %p1058_p3 }
  0x6e   : > { %p1066_p5 = pnand %p1065_p4, %p1059_p7 }
  0x70   : > { %1069 = shalt.err (!%p1066_p5)
}
  0x71   : > { %p1658_p11 = scmp.ne.s32.totalorder %s1647_s8, 0  ;;  %s1070_s18 = scalar_lea.hbm %s1616_s4, 512 }
  0x72   : > { %p1071_p12 = scmp.ne.s32.totalorder %s1616_s4, %s1070_s18  ;;  %p1077_p6 = scmp.lt.u32.totalorder %s1070_s18, %s1616_s4 }
  0x73   : > { %913 = dma.hbm_to_vmem [thread:$0]  (!%p1658_p11), %s1612_s0, 256, %s205_s14, [#allocation4], %s1657_s23, %s1657_s23, %s1656_s3  }
  0x74   : > { %p1073_p5 = pnand %p1071_p12, %p1349_p13 }
  0x76   : > { %p1074_p10 = pneg %p1073_p5 }
  0x78   : > { %p1079_p8 = pnand %p1077_p6, %p1074_p10 }
  0x7a   : > { %1082 = shalt.err (!%p1079_p8)
}
  0x7b   : > { %s1083_s19 = scalar_lea.vmem %s231_s20, 512  ;;  %p1091_p1 = scmp.lt.s32.totalorder %s231_s20, %s231_s20 }
  0x7c   : > { %p1084_p9 = scmp.ne.s32.totalorder %s231_s20, %s1083_s19  ;;  %p1092_p2 = scmp.lt.s32.totalorder %s1083_s19, %s1083_s19 }
  0x7e   : > { %p1086_p3 = pnand %p1084_p9, %p1349_p13  ;;  %p1093_p4 = por %p1092_p2, %p1091_p1 }
  0x80   : > { %p1087_p7 = pneg %p1086_p3 }
  0x82   : > { %p1094_p0 = pnand %p1093_p4, %p1087_p7 }
  0x84   : > { %1097 = shalt.err (!%p1094_p0)
}
  0x85   : > { %919 = dma.hbm_to_vmem [thread:$0]  (!%p1658_p11), %s1616_s4, 512, %s231_s20, [#allocation10], %s1657_s23, %s1657_s23, %s1656_s3  }
  0x86   : > { %s1242_s1 = smov [#allocation12]   ;;  %s1098_s18 = scalar_lea.hbm %s1617_s5, 16 }
  0x87   : > { %s244_s21 = sshll.u32 %s1242_s1, 4  ;;  %p1099_p0 = scmp.ne.s32.totalorder %s1617_s5, %s1098_s18  ;;  %s245_s21 = int_to_ptr.vmem [resolvable:$true] %s244_s21 }
  0x88   : > { %p1105_p10 = scmp.lt.u32.totalorder %s1098_s18, %s1617_s5 }
  0x89   : > { %p1101_p12 = pnand %p1099_p0, %p1349_p13 }
  0x8b   : > { %p1102_p5 = pneg %p1101_p12 }
  0x8d   : > { %p1107_p6 = pnand %p1105_p10, %p1102_p5 }
  0x8f   : > { %1110 = shalt.err (!%p1107_p6)
}
  0x90   : > { %s1111_s20 = scalar_lea.vmem %s245_s21, 16  ;;  %s1118_s19 = scalar_lea.vmem %s245_s21, 32 }
  0x91   : > { %p1112_p8 = scmp.ne.s32.totalorder %s245_s21, %s1111_s20  ;;  %p1119_p7 = scmp.lt.s32.totalorder %s245_s21, %s245_s21 }
  0x92   : > { %p1120_p1 = scmp.lt.s32.totalorder %s1118_s19, %s1111_s20 }
  0x93   : > { %p1114_p9 = pnand %p1112_p8, %p1349_p13 }
  0x94   : > { %p1121_p2 = por %p1120_p1, %p1119_p7 }
  0x95   : > { %p1115_p3 = pneg %p1114_p9 }
  0x97   : > { %p1122_p4 = pnand %p1121_p2, %p1115_p3 }
  0x99   : > { %1125 = shalt.err (!%p1122_p4)
}
  0x9a   : > { %922 = dma.hbm_to_vmem [thread:$0]  (!%p1658_p11), %s1617_s5, 16, %s245_s21, [#allocation13]  }
  0x9b   : > { %s1126_s17 = scalar_lea.hbm %s1401_s12, 256  ;;  %p1659_p0 = scmp.ne.s32.totalorder %s1655_s26, 0 }
  0x9c   : > { %p1127_p13 = scmp.ne.s32.totalorder %s1401_s12, %s1126_s17  ;;  %s1131_s28 = scalar_lea.hbm %s1614_s2, 512 }
  0x9d   : > { %p1660_p12 = pneg %p1659_p0  ;;  %p1132_p6 = scmp.lt.u32.totalorder %s1401_s12, %s1614_s2 }
  0x9e   : > { %p1133_p8 = scmp.lt.u32.totalorder %s1131_s28, %s1126_s17  ;;  %p1135_p3 = scmp.lt.u32.totalorder %s1126_s17, %s1401_s12 }
  0x9f   : > { %p1129_p5 = pnand %p1127_p13, %p1660_p12 }
  0xa0   : > { %p1134_p9 = por %p1133_p8, %p1132_p6 }
  0xa1   : > { %p1130_p10 = pneg %p1129_p5 }
  0xa2   : > { %p1136_p7 = por %p1135_p3, %p1134_p9 }
  0xa4   : > { %p1137_p1 = pnand %p1136_p7, %p1130_p10 }
  0xa6   : > { %1140 = shalt.err (!%p1137_p1)
}
  0xa7   : > { %s1141_s21 = scalar_lea.vmem %s1480_s10, 256  ;;  %p1661_p2 = pmov %p1660_p12 }
  0xa8   : > { %p1142_p11 = scmp.ne.s32.totalorder %s1480_s10, %s1141_s21  ;;  %s1243_s30 = smov [#allocation8]  }
  0xa9   : > { %s1146_s16 = sshll.u32 %s1243_s30, 4  ;;  %s1147_s16 = int_to_ptr.vmem [resolvable:$false] %s1146_s16 }
  0xaa   : > { %p1144_p4 = pnand %p1142_p11, %p1661_p2  ;;  %s1148_s9 = scalar_lea.vmem %s1147_s16, 512 }
  0xab   : > { %p1149_p12 = scmp.lt.s32.totalorder %s1480_s10, %s1147_s16  ;;  %p1150_p5 = scmp.lt.s32.totalorder %s1148_s9, %s1141_s21 }
  0xac   : > { %p1145_p13 = pneg %p1144_p4 }
  0xad   : > { %p1151_p6 = por %p1150_p5, %p1149_p12 }
  0xaf   : > { %p1152_p8 = pnand %p1151_p6, %p1145_p13 }
  0xb1   : > { %1155 = shalt.err (!%p1152_p8)
}
  0xb2   : > { %929 = dma.hbm_to_vmem [thread:$0]  (!%p1659_p0), %s1401_s12, 256, %s1480_s10, %s1403_s7, %s1657_s23, %s1657_s23, %s1656_s3  }
  0xb3   : > { %p1662_p10 = scmp.ne.s32.totalorder %s1646_s29, 0 }
  0xb4   : > { %p1663_p9 = scmp.eq.s32.totalorder (!%p1662_p10), %s1303_s25, 0 }
  0xb5   : > { %299 = sbr.rel (%p1662_p10) target bundleno = 662 (0x296), region = 44 }
  0xbc   : > { %1201 = dma.done.wait (%p1663_p9), [#allocation4], 256   ;;  %p1664_p3 = pmov %p1663_p9 }
  0xbd   : > { %s305_s26 = sand.u32 1, %s1303_s25   ;;  %s307_s11 = sand.u32 1, %s1226_s22  }
  0xbe   : > { %1203 = vsyncadd (%p1664_p3), [#allocation4], 4294967040  ;;  %s1537_s20 = sshll.u32 %s307_s11, 4  ;;  %s306_s12 = scalar_lea.sflag [#allocation7], %s305_s26 }
  0xbf   : > { %s309_s7 = scalar_lea.vmem [#allocation6], %s1537_s20  ;;  %p1665_p0 = scmp.ne.s32.totalorder %s1643_s27, 0 }
  0xc1   : > { %1205 = dma.done.wait (%p1665_p0), %s306_s12, 512  }
  0xc2   : > { %1207 = vsyncadd (%p1665_p0), %s306_s12, 4294966784  ;;  %s318_s29 = scalar_lea.vmem [#allocation8], %s1537_s20  ;;  %p1666_p7 = pmov %p1664_p3 }
  0xc3   : > { %p1667_p1 = pmov %p1664_p3 }
  0xc4   : > { %1209 = dma.done.wait (%p1666_p7), [#allocation10], 896  }
  0xc5   : > { %1211 = vsyncadd (%p1667_p1), [#allocation10], 4294966400  ;;  %p1668_p11 = pmov %p1667_p1 }
  0xc6   : > { %p1669_p2 = pmov %p1667_p1 }
  0xc7   : > { %1213 = dma.done.wait (%p1668_p11), [#allocation13], 16  }
  0xc8   : > { %1215 = vsyncadd (%p1669_p2), [#allocation13], 4294967280  ;;  %v374_v0 = vld [vmem:[#allocation11] sm:$0xff]  ;;  %v375_v1 = vld [vmem:[#allocation11 + $0x8] sm:$0xff]  ;;  %vm460_vm0 = vcmask 138240   ;;  %vm467_vm1 = vcmask 1040384  }
  0xc9   : > { %v369_v2 = vld [vmem:[#allocation9] sm:$0xff]  ;;  %v870_v3 = vpack.c.bf16 %v375_v1, %v374_v0  ;;  %v370_v4 = vld [vmem:[#allocation9 + $0x8] sm:$0xff]  ;;  %v377_v6 = vld [vmem:[#allocation11 + $0x18] sm:$0xff]  ;;  %vm378_vm2 = vcmask 261120   ;;  %vm559_vm3 = vcmask 130048   ;;  %s363_s27 = scalar_lea.vmem [#allocation14], %s1537_s20 }
  0xca   : > { %v376_v5 = vld [vmem:[#allocation11 + $0x10] sm:$0xff]  ;;  %v878_v7 = vpack.c.bf16 %v370_v4, %v369_v2  ;;  %v367_v9 = vld [vmem:[%s309_s7] sm:$0xff]  ;;  %v549_v22 = vld [vmem:[#allocation3 + $0x8] sm:$0xff]  ;;  %s657_s3 = sshll.u32 %s363_s27, 4  ;;  %s827_s23 = sshll.u32 %s1303_s25, 8  ;;  %s1561_s3 = int_to_ptr.vmem [resolvable:$true] %s657_s3 }
  0xcb   : > { %v874_v8 = vpack.c.bf16 %v377_v6, %v376_v5  ;;  %871 = vmatprep.subr.bf16.mxu0 %v870_v3  ;;  %v371_v10 = vld [vmem:[#allocation9 + $0x10] sm:$0x1]  ;;  %860 = vmatprep.mubr.msk.f32.mxu1 %vm460_vm0, %v367_v9  ;;  %v368_v12 = vld [vmem:[%s309_s7 + $0x8] sm:$0xff]  ;;  %s1566_s14 = scalar_lea.hbm %s1618_s6, %s827_s23  ;;  %s1570_s13 = scalar_lea.sflag [#allocation5], %s307_s11 }
  0xcc   : > { %v372_v11 = vld [vmem:[%s318_s29] sm:$0xff]  ;;  %873 = vmatpush3.bf16.msra.mxu0 %v870_v3  ;;  %879 = vmatprep.subr.bf16.mxu1 %v878_v7  ;;  %v373_v13 = vld [vmem:[%s318_s29 + $0x8] sm:$0xff]  ;;  %s1156_s25 = scalar_lea.vmem %s1561_s3, 256  ;;  %p1670_p13 = scmp.ne.s32.totalorder %s1653_s15, 0 }
  0xcd   : > { %881 = vmatpush3.bf16.msra.mxu1 %v878_v7  ;;  %875 = vmatprep.subr.bf16.mxu0 %v874_v8  ;;  %v548_v14 = vld [vmem:[#allocation3] sm:$0xff]  ;;  %v817_v23 = vld [vmem:[#allocation12] ss:$0 sm:$0xff]  ;;  %p1157_p4 = scmp.ne.s32.totalorder %s1561_s3, %s1156_s25  ;;  %s1244_s17 = smov [#allocation14]  }
  0xce   : > { %858 = vmatprep.subr.msk.mxu1 %vm467_vm1, %v371_v10  ;;  %851 = vmatprep.mubr.msk.f32.mxu0 %vm378_vm2, %v372_v11  ;;  %s1160_s1 = sshll.u32 %s1244_s17, 4  ;;  %s1161_s1 = int_to_ptr.vmem [resolvable:$false] %s1160_s1 }
  0xcf   : > { %p1158_p12 = pnand %p1157_p4, %p1670_p13  ;;  %s1162_s24 = scalar_lea.vmem %s1161_s1, 512 }
  0xd0   : > { %877 = vmatpush3.bf16.msra.mxu0 %v874_v8  ;;  %p1163_p6 = scmp.lt.s32.totalorder %s1561_s3, %s1161_s1  ;;  %p1164_p8 = scmp.lt.s32.totalorder %s1162_s24, %s1156_s25 }
  0xd1   : > { %859 = vmatpush3.msk.msra.mxu1 %vm467_vm1, %v371_v10  ;;  %p1159_p5 = pneg %p1158_p12 }
  0xd2   : > { %861 = vmatmul.mubr.msk.f32.vlgmr.msra.gmra.mrb[0].mxu1 %vm460_vm0, %v368_v12  ;;  %p1165_p10 = por %p1164_p8, %p1163_p6 }
  0xd3   : > { %852 = vmatmul.mubr.msk.f32.vlgmr.msra.gmra.mrb[0].mxu0 %vm378_vm2, %v373_v13  ;;  %867 = vmatprep.mubr.msk.f32.mxu1 %vm559_vm3, %v548_v14 }
  0xd4   : > { %p1166_p9 = pnand %p1165_p10, %p1159_p5 }
 0x1a5   : > { %v862_v15 = vpop.f32.mrb[0].mxu1 }
 0x1a6   : > { %v853_v16 = vpop.f32.mrb[0].mxu0  ;;  %v537_v17 = vpop.f32.mrb[1].mxu1 }
 0x1a7   : > { %v543_v18 = vadd.f32 %v862_v15, %v853_v16  ;;  %v451_v19 = vpop.f32.mrb[1].mxu0 }
 0x1a8   : > { %v538_v20 = vadd.f32 %v537_v17, %v451_v19 }
 0x1aa   : > { %v882_v21 = vpack.c.bf16 %v543_v18, %v538_v20 }
 0x1ac   : > { %883 = vmatprep.subr.bf16.mxu1 %v882_v21 }
 0x1ad   : > { %885 = vmatpush3.bf16.msra.mxu1 %v882_v21 }
 0x1b0   : > { %868 = vmatmul.mubr.msk.f32.vlgmr.msra.gmra.mrb[2].mxu1 %vm559_vm3, %v549_v22 }
 0x283   : > { %v869_v24 = vpop.f32.mrb[2].mxu1 }
 0x284   : > { %v638_v25 = vadd.f32 %v869_v24, %v817_v23  ;;  %v632_v26 = vpop.f32.mrb[3].mxu1 }
 0x285   : > { %v633_v27 = vadd.f32 %v817_v23, %v632_v26 }
 0x286   : > { %642 = vst [vmem:[%s363_s27 + $0x8] sm:$0xff] %v638_v25 }
 0x287   : > { %641 = vst [vmem:[%s363_s27] sm:$0xff] %v633_v27 }
 0x288   : > { %1169 = shalt.err (!%p1166_p9)
}
 0x289   : > { %s1170_s28 = scalar_lea.hbm %s1566_s14, 256  ;;  %s1174_s21 = scalar_lea.hbm %s1618_s6, 512 }
 0x28a   : > { %p1171_p3 = scmp.ne.s32.totalorder %s1566_s14, %s1170_s28  ;;  %p1175_p1 = scmp.lt.u32.totalorder %s1566_s14, %s1618_s6 }
 0x28b   : > { %p1176_p11 = scmp.lt.u32.totalorder %s1174_s21, %s1170_s28  ;;  %p1178_p4 = scmp.lt.u32.totalorder %s1170_s28, %s1566_s14 }
 0x28c   : > { %p1172_p0 = pnand %p1171_p3, %p1670_p13 }
 0x28d   : > { %p1177_p2 = por %p1176_p11, %p1175_p1 }
 0x28e   : > { %p1173_p7 = pneg %p1172_p0 }
 0x28f   : > { %p1179_p12 = por %p1178_p4, %p1177_p2 }
 0x291   : > { %p1180_p5 = pnand %p1179_p12, %p1173_p7 }
 0x293   : > { %1183 = shalt.err (!%p1180_p5)
}
 0x294   : > { %s1245_s9 = smov 128   ;;  %s1246_s26 = smov 8  }
 0x295   : > { %908 = dma.vmem_to_hbm [thread:$0]  (%p1670_p13), %s1561_s3, 256, %s1566_s14, %s1570_s13, %s1245_s9, %s1245_s9, %s1246_s26  }
 0x296 PF: > { %s1671_s11 = sld [smem:[#allocation20_spill]]  ;;  %s1672_s20 = sld [smem:[#allocation23_spill]] }
 0x297   : > { %s1673_s12 = sld [smem:[#allocation22_spill]] }
 0x29c   : > { %s672_s7 = sand.u32 1, %s1671_s11   ;;  %p1674_p6 = scmp.ne.s32.totalorder %s1672_s20, 0 }
 0x29d   : > { %p1675_p8 = scmp.ge.s32.totalorder %s1673_s12, 2  ;;  %s673_s29 = scalar_lea.sflag [#allocation5], %s672_s7 }
 0x29f   : > { %p931_p10 = pnand %p1675_p8, %p1674_p6 }
 0x2a1   : > { %1217 = dma.done.wait (!%p931_p10), %s673_s29, 256  }
 0x2a2   : > { %1219 = vsyncadd (!%p931_p10), %s673_s29, 4294967040  ;;  %s1676_s24 = sld [smem:[#allocation24_spill]]  ;;  %s1677_s27 = sld [smem:[#allocation21_spill]] }
 0x2a3   : > { %s1678_s23 = sld [smem:[#allocation25_spill]]  ;;  %s1679_s21 = smov %s1226_s22 }
 0x2a8   : > { %p22_p9 = scmp.ge.s32.totalorder %s1676_s24, 4   ;;  %s1680_s22 = smov %s1677_s27 }
 0x2aa   :  { %24 = sbr.rel (!%p22_p9) target bundleno = 11 (0xb), region = 117 }
 0x2b1   :  { %678 = vsyncpa [#allocation4], 1 }
 0x2b2   :  { %680 = vsyncpa [#allocation4 + $0x1], 1 }
 0x2b3   :  { %681 = vsyncpa [#allocation7], 1 }
 0x2b4   :  { %683 = vsyncpa [#allocation7 + $0x1], 1 }
 0x2b5   :  { %684 = vsyncpa [#allocation10], 1 }
 0x2b6   :  { %685 = vsyncpa [#allocation13], 1 }
 0x2b7   :  { %686 = vsyncpa [#allocation5], 1 }
 0x2b8   :  { %688 = vsyncpa [#allocation5 + $0x1], 1 }

</bundles_post_ra>
